<compile_context>
chip_gen: v5e
topology: v5e:2x2
jax: 0.10.0
libtpu: 0.0.40
codegen_flags: <defaults>
</compile_context>

<pallas_src>
import jax
import jax.numpy as jnp
from jax.experimental import pallas as pl
from jax.experimental.pallas import tpu as pltpu


def _round_up(x, m):
    return (x + m - 1) // m * m


def _fusion_kernel(x1_ref, x2_ref, w1_ref, w2_ref, b_ref, o_ref):
    x1 = x1_ref[...]
    x2 = x2_ref[...]
    wdt = w1_ref.dtype
    # MXU: the concatenated Linear as two split matmuls, f32 accumulation.
    z = (
        jnp.dot(x1.astype(wdt), w1_ref[...], preferred_element_type=jnp.float32)
        + jnp.dot(x2.astype(wdt), w2_ref[...], preferred_element_type=jnp.float32)
        + b_ref[...].astype(jnp.float32)
    )
    g = jax.nn.sigmoid(z)                       # EUP (transcendental slot)
    x1f = x1.astype(jnp.float32)
    x2f = x2.astype(jnp.float32)
    # f32 gated blend on the VPU: x2 + g*(x1-x2) == g*x1 + (1-g)*x2 (one fewer op).
    o_ref[...] = (x2f + g * (x1f - x2f)).astype(o_ref.dtype)


def prepare_fusion_params(w, b, *, compute_dtype=jnp.bfloat16):
    """Pre-split the PyTorch Linear(2D, D) weight ONCE at parameter-init time.

    w: (D, 2D) in PyTorch (out, in) layout.  b: (D,)
    Returns w1, w2 of shape (D, D) in `compute_dtype` and bias (1, D) in f32.
    """
    D = b.shape[0]
    assert w.shape == (D, 2 * D) and b.shape == (D,)
    wt = w.T.astype(compute_dtype)              # (2D, D)
    return wt[:D, :], wt[D:, :], b.astype(jnp.float32).reshape(1, D)


def _vmem_limits():
    """Returns (vmem_limit_bytes to request, working budget used for tile sizing)."""
    try:
        cap = pltpu.get_tpu_info().vmem_capacity_bytes  # 64 MiB/TC on v7x, 128 MiB on v5e/v6e
        limit = int(cap * 3 // 4)
    except Exception:
        limit = None                             # fall back to the compiler default
    budget = int(limit * 0.8) if limit is not None else 24 * 1024 * 1024
    return limit, budget


def cross_modal_fusion(x1, x2, w1, w2, b2d, *, tile_b=None, act_buffers=None):
    """x1, x2: (B, D) activations (bf16 recommended -- the kernel is HBM-bound).
    w1, w2: (D, D) and b2d: (1, D) from prepare_fusion_params."""
    B, D = x1.shape
    assert x2.shape == (B, D)
    assert w1.shape == (D, D) and w2.shape == (D, D) and b2d.shape == (1, D)

    act_bytes = jnp.dtype(x1.dtype).itemsize
    w_bytes = jnp.dtype(w1.dtype).itemsize
    vmem_limit, vmem_budget = _vmem_limits()

    # Activation pipeline depth: 3-deep for small D, 2-deep otherwise.
    if act_buffers is None:
        act_buffers = 3 if D <= 512 else 2

    if tile_b is None:
        # VMEM budget model: weights+bias single-buffered & resident; x1/x2/out each
        # act_buffers-deep; ~3 f32 (tile_b, D) elementwise temporaries (z/g, blend).
        resident = 2 * D * D * w_bytes + 4 * D
        per_row = 3 * act_buffers * D * act_bytes + 3 * D * 4
        avail = max(vmem_budget - resident, 8 * per_row)
        tile_b = min((avail // per_row) // 8 * 8, 2048)

    # Keep >= ~4 grid steps so the "parallel" batch axis can shard across v7x's 2 TCs
    # and each core still overlaps DMA with compute. Always a multiple of 8 (sublanes).
    tile_b = max(8, min(_round_up(tile_b, 8), _round_up(pl.cdiv(B, 4), 8)))

    num_steps = pl.cdiv(B, tile_b)      # ragged last block: reads padded, writes masked
    act_buffers = min(act_buffers, max(2, num_steps))

    cost = pl.CostEstimate(
        flops=4 * B * D * D,            # two (B,D)x(D,D) matmuls
        transcendentals=B * D,          # sigmoid
        bytes_accessed=int(3 * B * D * act_bytes + 2 * D * D * w_bytes + 4 * D),
    )

    act_mode = pl.Buffered(act_buffers)
    resident_mode = pl.Buffered(1)      # constant index_map -> fetched once, stays resident

    out = pl.pallas_call(
        _fusion_kernel,
        out_shape=jax.ShapeDtypeStruct((B, D), x1.dtype),
        grid_spec=pltpu.PrefetchScalarGridSpec(
            num_scalar_prefetch=0,
            grid=(num_steps,),
            in_specs=[
                pl.BlockSpec((tile_b, D), lambda i: (i, 0), pipeline_mode=act_mode),   # x1
                pl.BlockSpec((tile_b, D), lambda i: (i, 0), pipeline_mode=act_mode),   # x2
                pl.BlockSpec((D, D), lambda i: (0, 0), pipeline_mode=resident_mode),   # w1
                pl.BlockSpec((D, D), lambda i: (0, 0), pipeline_mode=resident_mode),   # w2
                pl.BlockSpec((1, D), lambda i: (0, 0), pipeline_mode=resident_mode),   # bias
            ],
            out_specs=pl.BlockSpec((tile_b, D), lambda i: (i, 0), pipeline_mode=act_mode),
        ),
        compiler_params=pltpu.CompilerParams(
            dimension_semantics=("parallel",),   # megacore sharding on v7x
            vmem_limit_bytes=vmem_limit,
        ),
        cost_estimate=cost,
    )(x1, x2, w1, w2, b2d)
    return out


if __name__ == "__main__":
    # Small demo shapes consistent with the module: dim=32 features, small batch.
    B, D = 8, 32

    key = jax.random.PRNGKey(0)
    k1, k2, kw, kb = jax.random.split(key, 4)

    x1_f32 = jax.random.normal(k1, (B, D), dtype=jnp.float32)
    x2_f32 = jax.random.normal(k2, (B, D), dtype=jnp.float32)
    # Deterministic synthetic Linear(dim*2, dim) parameters (PyTorch layout: (out, in)).
    w = jax.random.normal(kw, (D, 2 * D), dtype=jnp.float32) * 0.1
    b = jax.random.normal(kb, (D,), dtype=jnp.float32) * 0.1

    def ref_fusion(a1, a2):
        z = jnp.concatenate([a1, a2], axis=1) @ w.T + b
        g = jax.nn.sigmoid(z)
        return g * a1 + (1.0 - g) * a2

    # 1) f32 path: tight structural check of the kernel.
    w1f, w2f, bf = prepare_fusion_params(w, b, compute_dtype=jnp.float32)
    out_f32 = jax.block_until_ready(cross_modal_fusion(x1_f32, x2_f32, w1f, w2f, bf))
    assert out_f32.shape == (B, D)
    assert jnp.allclose(out_f32, ref_fusion(x1_f32, x2_f32), atol=1e-3, rtol=1e-3), \
        "f32 path mismatch"

    # 2) Production path: bf16 activations at the HBM boundary + bf16 weights,
    #    with f32 matmul accumulation and an f32 sigmoid/blend inside the kernel.
    x1_bf = x1_f32.astype(jnp.bfloat16)
    x2_bf = x2_f32.astype(jnp.bfloat16)
    w1b, w2b, bb = prepare_fusion_params(w, b)       # compute_dtype=bf16
    out_bf = jax.block_until_ready(cross_modal_fusion(x1_bf, x2_bf, w1b, w2b, bb))
    assert out_bf.shape == (B, D) and out_bf.dtype == jnp.bfloat16
    ref_bf = ref_fusion(x1_bf.astype(jnp.float32), x2_bf.astype(jnp.float32))
    assert jnp.allclose(out_bf.astype(jnp.float32), ref_bf, atol=3e-2, rtol=3e-2), \
        "bf16 path mismatch"

    # 3) Ragged batch: B not a multiple of the tile, no wrapper pad/slice -- Pallas
    #    masks the writeback of the out-of-range rows of the last block.
    Br = 13
    x1_r = jax.random.normal(jax.random.PRNGKey(1), (Br, D), jnp.float32).astype(jnp.bfloat16)
    x2_r = jax.random.normal(jax.random.PRNGKey(2), (Br, D), jnp.float32).astype(jnp.bfloat16)
    out_r = jax.block_until_ready(cross_modal_fusion(x1_r, x2_r, w1b, w2b, bb, tile_b=8))
    assert out_r.shape == (Br, D)
    ref_r = ref_fusion(x1_r.astype(jnp.float32), x2_r.astype(jnp.float32))
    assert jnp.allclose(out_r.astype(jnp.float32), ref_r, atol=3e-2, rtol=3e-2), \
        "ragged-batch path mismatch"

    print("KERNEL_OK")
</pallas_src>

<mosaic_0001>
module attributes {stable_mosaic.version = 11 : i64} {
  func.func @_fusion_kernel(%arg0: i32, %arg1: memref<8x32xf32, #tpu.memory_space<vmem>>, %arg2: memref<8x32xf32, #tpu.memory_space<vmem>>, %arg3: memref<32x32xf32, #tpu.memory_space<vmem>>, %arg4: memref<32x32xf32, #tpu.memory_space<vmem>>, %arg5: memref<1x32xf32, #tpu.memory_space<vmem>>, %arg6: memref<8x32xf32, #tpu.memory_space<vmem>>) attributes {dimension_semantics = [#tpu.dimension_semantics<parallel>], iteration_bounds = array<i64: 1>, scalar_prefetch = 0 : i64, scratch_operands = 0 : i64, tpu.core_type = #tpu.core_type<tc>, window_params = [{pipeline_mode = #tpu.pipeline_mode<double_buffered>, transform_indices = @transform_0, window_bounds = array<i64: 8, 32>}, {pipeline_mode = #tpu.pipeline_mode<double_buffered>, transform_indices = @transform_1, window_bounds = array<i64: 8, 32>}, {pipeline_mode = #tpu.pipeline_mode<synchronous>, transform_indices = @transform_2, window_bounds = array<i64: 32, 32>}, {pipeline_mode = #tpu.pipeline_mode<synchronous>, transform_indices = @transform_3, window_bounds = array<i64: 32, 32>}, {pipeline_mode = #tpu.pipeline_mode<synchronous>, transform_indices = @transform_4, window_bounds = array<i64: 1, 32>}, {pipeline_mode = #tpu.pipeline_mode<double_buffered>, transform_indices = @transform_5, window_bounds = array<i64: 8, 32>}]} {
    %c0 = arith.constant 0 : index
    %c0_0 = arith.constant 0 : index
    %0 = vector.load %arg1[%c0, %c0_0] : memref<8x32xf32, #tpu.memory_space<vmem>>, vector<8x32xf32>
    %c0_1 = arith.constant 0 : index
    %c0_2 = arith.constant 0 : index
    %1 = vector.load %arg2[%c0_1, %c0_2] : memref<8x32xf32, #tpu.memory_space<vmem>>, vector<8x32xf32>
    %c0_3 = arith.constant 0 : index
    %c0_4 = arith.constant 0 : index
    %2 = vector.load %arg3[%c0_3, %c0_4] : memref<32x32xf32, #tpu.memory_space<vmem>>, vector<32x32xf32>
    %cst = arith.constant dense<0.000000e+00> : vector<8x32xf32>
    %3 = tpu.matmul %0, %2, %cst {dimension_numbers = #tpu.dot_dimension_numbers<[1], [0], [0], [1], [0, 0, 1, 1], [], []>} : vector<8x32xf32>, vector<32x32xf32>, vector<8x32xf32> -> vector<8x32xf32>
    %c0_5 = arith.constant 0 : index
    %c0_6 = arith.constant 0 : index
    %4 = vector.load %arg4[%c0_5, %c0_6] : memref<32x32xf32, #tpu.memory_space<vmem>>, vector<32x32xf32>
    %cst_7 = arith.constant dense<0.000000e+00> : vector<8x32xf32>
    %5 = tpu.matmul %1, %4, %cst_7 {dimension_numbers = #tpu.dot_dimension_numbers<[1], [0], [0], [1], [0, 0, 1, 1], [], []>} : vector<8x32xf32>, vector<32x32xf32>, vector<8x32xf32> -> vector<8x32xf32>
    %6 = arith.addf %3, %5 : vector<8x32xf32>
    %c0_8 = arith.constant 0 : index
    %c0_9 = arith.constant 0 : index
    %7 = vector.load %arg5[%c0_8, %c0_9] : memref<1x32xf32, #tpu.memory_space<vmem>>, vector<1x32xf32>
    %8 = vector.broadcast %7 : vector<1x32xf32> to vector<8x32xf32>
    %9 = arith.addf %6, %8 : vector<8x32xf32>
    %10 = arith.negf %9 : vector<8x32xf32>
    %11 = math.exp %10 : vector<8x32xf32>
    %cst_10 = arith.constant 1.000000e+00 : f32
    %12 = vector.broadcast %cst_10 : f32 to vector<8x32xf32>
    %13 = arith.addf %12, %11 : vector<8x32xf32>
    %14 = arith.divf %12, %13 : vector<8x32xf32>
    %15 = arith.subf %0, %1 : vector<8x32xf32>
    %16 = arith.mulf %14, %15 : vector<8x32xf32>
    %17 = arith.addf %1, %16 : vector<8x32xf32>
    %c0_11 = arith.constant 0 : index
    %c0_12 = arith.constant 0 : index
    %18 = vector.load %arg6[%c0_11, %c0_12] : memref<8x32xf32, #tpu.memory_space<vmem>>, vector<8x32xf32>
    tpu.vector_store %arg6[%c0_11, %c0_12], %17 {strides = array<i32>} : memref<8x32xf32, #tpu.memory_space<vmem>>, vector<8x32xf32>,
    return
  }
  func.func @transform_0(%arg0: i32) -> (i32, i32) {
    %c0_i32 = arith.constant 0 : i32
    %c0_i32_0 = arith.constant 0 : i32
    return %arg0, %c0_i32 : i32, i32
  }
  func.func @transform_1(%arg0: i32) -> (i32, i32) {
    %c0_i32 = arith.constant 0 : i32
    %c0_i32_0 = arith.constant 0 : i32
    return %arg0, %c0_i32 : i32, i32
  }
  func.func @transform_2(%arg0: i32) -> (i32, i32) {
    %c0_i32 = arith.constant 0 : i32
    %c0_i32_0 = arith.constant 0 : i32
    %c0_i32_1 = arith.constant 0 : i32
    return %c0_i32, %c0_i32_0 : i32, i32
  }
  func.func @transform_3(%arg0: i32) -> (i32, i32) {
    %c0_i32 = arith.constant 0 : i32
    %c0_i32_0 = arith.constant 0 : i32
    %c0_i32_1 = arith.constant 0 : i32
    return %c0_i32, %c0_i32_0 : i32, i32
  }
  func.func @transform_4(%arg0: i32) -> (i32, i32) {
    %c0_i32 = arith.constant 0 : i32
    %c0_i32_0 = arith.constant 0 : i32
    %c0_i32_1 = arith.constant 0 : i32
    return %c0_i32, %c0_i32_0 : i32, i32
  }
  func.func @transform_5(%arg0: i32) -> (i32, i32) {
    %c0_i32 = arith.constant 0 : i32
    %c0_i32_0 = arith.constant 0 : i32
    return %arg0, %c0_i32 : i32, i32
  }
}

</mosaic_0001>

<bundles_post_ra>
// kernel: tpu_custom_call.1
= control target key start
LH: loop header
LB: loop body
LE: loop exit
PB: predicated region body
PF: predicated region fallthrough
CT: control target
= control target key end

     0   :  { %10 = vsyncpa [#allocation3], 0  ;;  %s385_s0 = inlined_call_operand.hbm [shape: f32[8,32], index: 0, kind: input, shape index: {}]   ;;  %s386_s1 = inlined_call_operand.hbm [shape: f32[8,32], index: 1, kind: input, shape index: {}]   ;;  %s387_s2 = inlined_call_operand.hbm [shape: f32[32,32], index: 2, kind: input, shape index: {}]   ;;  %s388_s3 = inlined_call_operand.hbm [shape: f32[32,32], index: 3, kind: input, shape index: {}]   ;;  %s389_s4 = inlined_call_operand.vmem [shape: f32[1,32], index: 4, kind: input, shape index: {}]   ;;  %s390_s5 = inlined_call_operand.hbm [shape: f32[8,32], index: 5, kind: output, shape index: {}]  }
   0x1   :  { %11 = vsyncpa [#allocation6], 0 }
   0x2   :  { %12 = vsyncpa [#allocation9], 0  ;;  %s30_s20 = sshll.u32 %s386_s1, 4  ;;  %s31_s20 = int_to_ptr.hbm [resolvable:$true] %s30_s20 }
   0x3   :  { %13 = vsyncpa [#allocation4], 0  ;;  %s327_s21 = smov [#allocation5]   ;;  %s19_s25 = sshll.u32 %s385_s0, 4  ;;  %s20_s25 = int_to_ptr.hbm [resolvable:$true] %s19_s25 }
   0x4   :  { %s32_s22 = sshll.u32 %s327_s21, 4  ;;  %s328_s26 = smov [#allocation2]   ;;  %s33_s22 = int_to_ptr.vmem [resolvable:$true] %s32_s22 }
   0x5   :  { %35 = dma.hbm_to_vmem [thread:$0]  %s31_s20, 128, %s33_s22, [#allocation6]  }
   0x6   :  { %s21_s27 = sshll.u32 %s328_s26, 4  ;;  %s40_s30 = sshll.u32 %s387_s2, 4  ;;  %s22_s27 = int_to_ptr.vmem [resolvable:$true] %s21_s27  ;;  %s41_s30 = int_to_ptr.hbm [resolvable:$true] %s40_s30 }
   0x7   :  { %24 = dma.hbm_to_vmem [thread:$0]  %s20_s25, 128, %s22_s27, [#allocation3]  }
   0x8   :  { %s329_s1 = smov [#allocation7]   ;;  %s53_s9 = sshll.u32 %s388_s3, 4  ;;  %s54_s9 = int_to_ptr.hbm [resolvable:$true] %s53_s9 }
   0x9   :  { %s42_s6 = sshll.u32 %s329_s1, 4  ;;  %s330_s10 = smov 128   ;;  %s43_s6 = int_to_ptr.vmem [resolvable:$true] %s42_s6 }
   0xa   :  { %s331_s0 = smov 8   ;;  %s332_s11 = smov [#allocation8]  }
   0xb   :  { %48 = dma.hbm_to_vmem [thread:$0]  %s41_s30, 512, %s43_s6, [#allocation6], %s330_s10, %s330_s10, %s331_s0  }
   0xc   :  { %s55_s12 = sshll.u32 %s332_s11, 4  ;;  %s56_s12 = int_to_ptr.vmem [resolvable:$true] %s55_s12 }
   0xd   :  { %61 = dma.hbm_to_vmem [thread:$0]  %s54_s9, 512, %s56_s12, [#allocation9], %s330_s10, %s330_s10, %s331_s0  }
   0xe   :  { %319 = dma.done.wait [#allocation3], 128  }
   0xf   :  { %320 = vsyncadd [#allocation3], 4294967168 }
  0x10   :  { %321 = dma.done.wait [#allocation6], 640  }
  0x11   :  { %322 = vsyncadd [#allocation6], 4294966656 }
  0x12   :  { %323 = dma.done.wait [#allocation9], 512  }
  0x13   :  { %324 = vsyncadd [#allocation9], 4294966784  ;;  %v89_v0 = vld [vmem:[#allocation8 + $0x18] sm:$0xff]  ;;  %v88_v2 = vld [vmem:[#allocation8 + $0x10] sm:$0xff]  ;;  %vm90_vm0 = vcmask 261120   ;;  %s172_s16 = sshll.u32 %s390_s5, 4  ;;  %s173_s16 = int_to_ptr.hbm [resolvable:$true] %s172_s16 }
  0x14   :  { %v85_v1 = vld [vmem:[#allocation7 + $0x18] sm:$0xff]  ;;  %106 = vmatpush.msra.mxu0 %v89_v0  ;;  %v84_v3 = vld [vmem:[#allocation7 + $0x10] sm:$0xff]  ;;  %v87_v4 = vld [vmem:[#allocation8 + $0x8] sm:$0xff] }
  0x15   :  { %129 = vmatpush.msra.mxu1 %v85_v1  ;;  %v83_v5 = vld [vmem:[#allocation7 + $0x8] sm:$0xff]  ;;  %v86_v6 = vld [vmem:[#allocation8] sm:$0xff]  ;;  %v81_v8 = vld [vmem:[#allocation5] sm:$0xff] }
  0x16   :  { %107 = vmatpush.msra.mxu0 %v88_v2  ;;  %v82_v7 = vld [vmem:[#allocation7] sm:$0xff]  ;;  %v80_v9 = vld [vmem:[#allocation2] sm:$0xff] }
  0x17   :  { %130 = vmatpush.msra.mxu1 %v84_v3  ;;  %v194_v10 = vld [vmem:[%s389_s4] ss:$0 sm:$0xff]  ;;  %v161_v24 = vsub.f32 %v80_v9, %v81_v8  ;;  %s333_s4 = smov [#allocation10]  }
  0x18   :  { %108 = vmatpush.msra.mxu0 %v87_v4  ;;  %s170_s13 = sshll.u32 %s333_s4, 4  ;;  %s171_s13 = int_to_ptr.vmem [resolvable:$true] %s170_s13 }
  0x19   :  { %131 = vmatpush.msra.mxu1 %v83_v5 }
  0x1a   :  { %109 = vmatpush.msra.mxu0 %v86_v6 }
  0x1b   :  { %132 = vmatpush.msra.mxu1 %v82_v7  ;;  %184 = vmatmul.msk.f32.vlgmr.msra.gmra.mxu0 %vm90_vm0, %v81_v8 }
  0x1c   :  { %185 = vmatmul.msk.f32.vlgmr.msra.gmra.mxu1 %vm90_vm0, %v80_v9 }
  0x98   :  { %v111_v11 = vpop.f32.mrf.mxu0 }
  0x99   :  { %v134_v12 = vpop.f32.mrf.mxu1 }
  0x9a   :  { %v135_v13 = vadd.f32 %v134_v12, %v111_v11 }
  0x9c   :  { %v141_v14 = vadd.f32 %v194_v10, %v135_v13 }
  0x9e   :  { %v186_v15 = vmul.f32 -1.442695, %v141_v14 }
  0xa0   :  { %195 = vpow2.f32 %v186_v15 }
  0xa6   :  { %v196_v16 = vpop.eup %195 }
  0xa7   :  { %v145_v17 = vadd.f32 1.0, %v196_v16 }
  0xa9   :  { %197 = vrcp.f32 %v145_v17  ;;  %v157_v21 = vand.u32 2147483648, %v145_v17  ;;  %v155_v23 = vand.u32 2147483647, %v145_v17  ;;  %vm151_vm2 = vweird.f32 %v145_v17 }
  0xab   :  { %v158_v26 = vor.u32 1.1754944e-38, %v157_v21  ;;  %vm156_vm4 = vcmp.eq.f32.partialorder %v155_v23, 8.507059e+37 }
  0xaf   :  { %v198_v18 = vpop.eup %197 }
  0xb0   :  { %v147_v19 = vmul.f32 %v198_v18, %v145_v17  ;;  %vm152_vm1 = vweird.f32 %v198_v18 }
  0xb1   :  { %vm153_vm3 = vmor %vm151_vm2, %vm152_vm1 }
  0xb2   :  { %v148_v20 = vsub.f32 1.0, %v147_v19 }
  0xb4   :  { %v149_v22 = vmul.f32 %v198_v18, %v148_v20 }
  0xb6   :  { %v150_v25 = vadd.f32 %v198_v18, %v149_v22 }
  0xb8   :  { %v154_v27 = vsel %vm153_vm3, %v198_v18, %v150_v25 }
  0xb9   :  { %v159_v28 = vsel %vm156_vm4, %v158_v26, %v154_v27 }
  0xba   :  { %v162_v29 = vmul.f32 %v161_v24, %v159_v28 }
  0xbc   :  { %v163_v30 = vadd.f32 %v162_v29, %v81_v8 }
  0xbe   :  { %164 = vst.msk [vmem:[#allocation10] sm:$0xff] %vm90_vm0, %v163_v30 }
  0xbf   :  { %175 = dma.vmem_to_hbm [thread:$0]  %s171_s13, 128, %s173_s16, [#allocation4]  }
  0xc0   :  { %325 = dma.done.wait [#allocation4], 128  }
  0xc1   :  { %326 = vsyncadd [#allocation4], 4294967168 }
  0xc2   :  { %180 = vsyncpa [#allocation3], 1 }
  0xc3   :  { %181 = vsyncpa [#allocation6], 1 }
  0xc4   :  { %182 = vsyncpa [#allocation9], 1 }
  0xc5   :  { %183 = vsyncpa [#allocation4], 1 }

</bundles_post_ra>
